<compile_context>
chip_gen: v7x
topology: tpu7x:2x2x1
jax: 0.10.0
libtpu: 0.0.40
codegen_flags: <defaults>
</compile_context>

<pallas_src>
import jax
import jax.numpy as jnp
from jax.experimental import pallas as pl
from jax.experimental.pallas import tpu as pltpu


def _round_up(v, m):
    return ((v + m - 1) // m) * m


def _pick_tile(dim, align, cap):
    """Largest multiple of `align` that divides `dim` and is <= cap.

    `dim` must itself be a multiple of `align`; falls back to `align`."""
    if dim <= cap:
        return dim
    best = align
    t = align
    while t <= cap:
        if dim % t == 0:
            best = t
        t += align
    return best


def _halve_tile(dim, align, cur):
    """Largest align-multiple divisor of `dim` that is <= cur // 2 (min `align`)."""
    cap = max(align, (cur // 2) // align * align)
    return _pick_tile(dim, align, cap)


def _hw_config():
    """Returns (vmem_limit_bytes, (cap_m, cap_n, cap_k)) per TPU generation."""
    try:
        vmem_physical = int(pltpu.get_tpu_info().vmem_capacity_bytes)
    except Exception:
        vmem_physical = 64 * 1024 * 1024  # conservative fallback: assume v7x
    if vmem_physical >= 96 * 1024 * 1024:
        # v5e / v6e: 128 MiB physical VMEM -> big tiles, deep K to cut HBM re-reads.
        return 96 * 1024 * 1024, (1024, 1024, 1024)
    # v7x: 64 MiB physical VMEM, ~3.2 TB/s HBM -> smaller, output-stationary tiling
    # (grow tn before tk), keep scoped budget <= ~48 MiB.
    return 48 * 1024 * 1024, (512, 1024, 512)


def _matmul_kernel_single_k(x_ref, w_ref, o_ref):
    # No K-reduction loop: write the MXU result straight to the output tile.
    o_ref[...] = jnp.dot(
        x_ref[...], w_ref[...], preferred_element_type=jnp.float32
    ).astype(o_ref.dtype)


def _matmul_kernel_acc(x_ref, w_ref, o_ref):
    # K is the innermost ("arbitrary") grid axis; the f32 output block stays
    # resident across k, so accumulate directly into o_ref -- no scratch needed.
    partial = jnp.dot(x_ref[...], w_ref[...], preferred_element_type=jnp.float32)

    @pl.when(pl.program_id(2) == 0)
    def _():
        o_ref[...] = partial

    @pl.when(pl.program_id(2) > 0)
    def _():
        o_ref[...] = o_ref[...] + partial


def attention_forward(x, weight, *, tm=None, tn=None, tk=None, use_bf16=False):
    """Computes x @ weight with a Pallas TPU kernel.

    x:      (M, K) float32
    weight: (K, N) float32
    returns (M, N) float32
    """
    M, K = x.shape
    K2, N = weight.shape
    assert K == K2, "inner dims must match"

    out_dtype = jnp.float32
    if use_bf16:
        # Optional fast path: native bf16 MXU issue, f32 accumulate, f32 output.
        x = x.astype(jnp.bfloat16)
        weight = weight.astype(jnp.bfloat16)
    else:
        x = x.astype(jnp.float32)
        weight = weight.astype(jnp.float32)
    itemsize = jnp.dtype(x.dtype).itemsize

    vmem_limit, (cap_m, cap_n, cap_k) = _hw_config()

    # ---- Tiny problems: one full-array block, no padding / slicing. ----------
    tiny = (
        tm is None and tn is None and tk is None
        and (M * K + K * N + M * N) * itemsize <= 4 * 1024 * 1024
    )
    if tiny:
        Mp, Kp, Np = M, K, N
        tm_, tk_, tn_ = M, K, N
    else:
        # Align dims to the hardware tiling FIRST...
        Ma, Ka, Na = _round_up(M, 8), _round_up(K, 128), _round_up(N, 128)
        # ...then pick tiles that evenly divide the aligned dims (defaults never
        # inflate FLOPs/bytes). Explicit overrides are auto-corrected to alignment.
        tm_ = _pick_tile(Ma, 8, cap_m) if tm is None else min(_round_up(tm, 8), Ma)
        tk_ = _pick_tile(Ka, 128, cap_k) if tk is None else min(_round_up(tk, 128), Ka)
        tn_ = _pick_tile(Na, 128, cap_n) if tn is None else min(_round_up(tn, 128), Na)
        # Padded dims (defaults divide exactly -> Mp == Ma etc.; only non-dividing
        # user overrides force extra padding).
        Mp, Kp, Np = _round_up(Ma, tm_), _round_up(Ka, tk_), _round_up(Na, tn_)

        # Megacore guard (v7x has 2 TensorCores): keep >= 2 parallel grid points on
        # mid/large problems so dimension_semantics=("parallel",...) actually shards.
        if (Mp // tm_) * (Np // tn_) == 1 and Mp * Np >= 512 * 512:
            if Np >= 2 * 128:
                tn_ = _halve_tile(Np, 128, tn_)
            elif Mp >= 2 * 8:
                tm_ = _halve_tile(Mp, 8, tm_)

    # Zero-padding is exact for matmul; extra output rows/cols are sliced off.
    if (Mp, Kp) != (M, K):
        x = jnp.pad(x, ((0, Mp - M), (0, Kp - K)))
    if (Kp, Np) != (K, N):
        weight = jnp.pad(weight, ((0, Kp - K), (0, Np - N)))

    gm, gn, gk = Mp // tm_, Np // tn_, Kp // tk_

    cost = pl.CostEstimate(
        flops=2 * Mp * Np * Kp,
        transcendentals=0,
        # Tiled re-reads: x is streamed gn times, weight gm times, output written once.
        bytes_accessed=(Mp * Kp * gn + Kp * Np * gm) * itemsize
        + Mp * Np * jnp.dtype(out_dtype).itemsize,
    )

    # NOTE: pipeline_mode=pl.Buffered(3) on the K-streamed operands can add ~5-15%
    # when the per-step DMA is exposed; left at the default depth to stay safely
    # inside the tighter v7x VMEM budget.
    if gk == 1:
        # Single K step -> scratch-free kernel, 2-D parallel grid.
        out = pl.pallas_call(
            _matmul_kernel_single_k,
            out_shape=jax.ShapeDtypeStruct((Mp, Np), out_dtype),
            grid_spec=pltpu.PrefetchScalarGridSpec(
                num_scalar_prefetch=0,
                grid=(gm, gn),
                in_specs=[
                    pl.BlockSpec((tm_, tk_), lambda i, j: (i, 0)),
                    pl.BlockSpec((tk_, tn_), lambda i, j: (0, j)),
                ],
                out_specs=pl.BlockSpec((tm_, tn_), lambda i, j: (i, j)),
            ),
            compiler_params=pltpu.CompilerParams(
                dimension_semantics=("parallel", "parallel"),
                vmem_limit_bytes=vmem_limit,
            ),
            cost_estimate=cost,
        )(x, weight)
    else:
        # K-reduction loop -> accumulate directly into the resident f32 output block.
        out = pl.pallas_call(
            _matmul_kernel_acc,
            out_shape=jax.ShapeDtypeStruct((Mp, Np), out_dtype),
            grid_spec=pltpu.PrefetchScalarGridSpec(
                num_scalar_prefetch=0,
                grid=(gm, gn, gk),
                in_specs=[
                    pl.BlockSpec((tm_, tk_), lambda i, j, k: (i, k)),
                    pl.BlockSpec((tk_, tn_), lambda i, j, k: (k, j)),
                ],
                out_specs=pl.BlockSpec((tm_, tn_), lambda i, j, k: (i, j)),
            ),
            compiler_params=pltpu.CompilerParams(
                dimension_semantics=("parallel", "parallel", "arbitrary"),
                vmem_limit_bytes=vmem_limit,
            ),
            cost_estimate=cost,
        )(x, weight)

    if (Mp, Np) != (M, N):
        out = out[:M, :N]
    return out


if __name__ == "__main__":
    key = jax.random.PRNGKey(0)
    k_x1, k_w1, k_x2, k_w2, k_x3, k_w3 = jax.random.split(key, 6)

    # 1) Shapes implied by the module (seq=8, input_dim=32): tiny single-block path,
    #    no padding, no slicing.
    M1, D1 = 8, 32
    x1 = jax.random.normal(k_x1, (M1, D1), dtype=jnp.float32)
    # nn.Parameter(torch.Tensor(D, D).uniform_(-1.0, 1.0)) -> uniform in [-1, 1)
    w1 = jax.random.uniform(k_w1, (D1, D1), dtype=jnp.float32, minval=-1.0, maxval=1.0)
    out1 = jax.block_until_ready(attention_forward(x1, w1))
    ref1 = x1 @ w1
    assert out1.shape == (M1, D1)
    assert jnp.allclose(out1, ref1, atol=1e-5, rtol=1e-5)

    # 2) Aligned mid-size shape with small explicit tiles: exercises the gk>1
    #    direct-into-output accumulation path and the parallel (gm, gn) grid.
    M2, D2 = 40, 640
    x2 = jax.random.normal(k_x2, (M2, D2), dtype=jnp.float32)
    w2 = jax.random.uniform(k_w2, (D2, D2), dtype=jnp.float32, minval=-1.0, maxval=1.0)
    out2 = jax.block_until_ready(attention_forward(x2, w2, tm=8, tn=128, tk=128))
    ref2 = x2 @ w2
    assert out2.shape == (M2, D2)
    assert jnp.allclose(out2, ref2, atol=1e-3, rtol=1e-3)

    # 3) Ragged shape with non-dividing tile overrides: exercises alignment padding,
    #    K accumulation, and the final output slice.
    M3, K3, N3 = 37, 200, 150
    x3 = jax.random.normal(k_x3, (M3, K3), dtype=jnp.float32)
    w3 = jax.random.uniform(k_w3, (K3, N3), dtype=jnp.float32, minval=-1.0, maxval=1.0)
    out3 = jax.block_until_ready(attention_forward(x3, w3, tm=16, tn=128, tk=128))
    ref3 = x3 @ w3
    assert out3.shape == (M3, N3)
    assert jnp.allclose(out3, ref3, atol=1e-3, rtol=1e-3)

    # 4) Optional bf16 MXU path (f32 accumulate) at the module's shapes; loose check.
    out4 = jax.block_until_ready(attention_forward(x1, w1, use_bf16=True))
    assert out4.shape == (M1, D1)
    assert jnp.allclose(out4, ref1, atol=2e-1, rtol=5e-2)

    print("KERNEL_OK")
</pallas_src>

<mosaic_0001>
module attributes {stable_mosaic.version = 11 : i64} {
  func.func @_matmul_kernel_single_k(%arg0: i32, %arg1: i32, %arg2: memref<8x32xf32, #tpu.memory_space<vmem>>, %arg3: memref<32x32xf32, #tpu.memory_space<vmem>>, %arg4: memref<8x32xf32, #tpu.memory_space<vmem>>) attributes {dimension_semantics = [#tpu.dimension_semantics<parallel>, #tpu.dimension_semantics<parallel>], iteration_bounds = array<i64: 1, 1>, scalar_prefetch = 0 : i64, scratch_operands = 0 : i64, tpu.core_type = #tpu.core_type<tc>, window_params = [{transform_indices = @transform_0, window_bounds = array<i64: 8, 32>}, {transform_indices = @transform_1, window_bounds = array<i64: 32, 32>}, {transform_indices = @transform_2, window_bounds = array<i64: 8, 32>}]} {
    %c0 = arith.constant 0 : index
    %c0_0 = arith.constant 0 : index
    %0 = vector.load %arg2[%c0, %c0_0] : memref<8x32xf32, #tpu.memory_space<vmem>>, vector<8x32xf32>
    %c0_1 = arith.constant 0 : index
    %c0_2 = arith.constant 0 : index
    %1 = vector.load %arg3[%c0_1, %c0_2] : memref<32x32xf32, #tpu.memory_space<vmem>>, vector<32x32xf32>
    %cst = arith.constant dense<0.000000e+00> : vector<8x32xf32>
    %2 = tpu.matmul %0, %1, %cst {dimension_numbers = #tpu.dot_dimension_numbers<[1], [0], [0], [1], [0, 0, 1, 1], [], []>} : vector<8x32xf32>, vector<32x32xf32>, vector<8x32xf32> -> vector<8x32xf32>
    %c0_3 = arith.constant 0 : index
    %c0_4 = arith.constant 0 : index
    %3 = vector.load %arg4[%c0_3, %c0_4] : memref<8x32xf32, #tpu.memory_space<vmem>>, vector<8x32xf32>
    tpu.vector_store %arg4[%c0_3, %c0_4], %2 {strides = array<i32>} : memref<8x32xf32, #tpu.memory_space<vmem>>, vector<8x32xf32>,
    return
  }
  func.func @transform_0(%arg0: i32, %arg1: i32) -> (i32, i32) {
    %c0_i32 = arith.constant 0 : i32
    %c0_i32_0 = arith.constant 0 : i32
    return %arg0, %c0_i32 : i32, i32
  }
  func.func @transform_1(%arg0: i32, %arg1: i32) -> (i32, i32) {
    %c0_i32 = arith.constant 0 : i32
    %c0_i32_0 = arith.constant 0 : i32
    return %c0_i32, %arg1 : i32, i32
  }
  func.func @transform_2(%arg0: i32, %arg1: i32) -> (i32, i32) {
    %c0_i32 = arith.constant 0 : i32
    return %arg0, %arg1 : i32, i32
  }
}

</mosaic_0001>

<bundles_post_ra>
// kernel: tpu_custom_call.1
= control target key start
LH: loop header
LB: loop body
LE: loop exit
PB: predicated region body
PF: predicated region fallthrough
CT: control target
= control target key end

     0   :  { %7 = vsyncpa [#allocation3], 0  ;;  %s303_s0 = inlined_call_operand.hbm [shape: f32[8,32], index: 0, kind: input, shape index: {}]   ;;  %s304_s1 = inlined_call_operand.hbm [shape: f32[32,32], index: 1, kind: input, shape index: {}]   ;;  %s305_s2 = inlined_call_operand.hbm [shape: f32[8,32], index: 2, kind: output, shape index: {}]  }
   0x1   :  { %8 = vsyncpa [#allocation6], 0 }
   0x2   :  { %9 = vsyncpa [#allocation4], 0  ;;  %s237_s9 = smov [#allocation2]   ;;  %s238_s11 = smov [#allocation5]  }
   0x3   :  { %s16_s10 = sshll.u32 %s237_s9, 4  ;;  %s25_s12 = sshll.u32 %s238_s11, 4  ;;  %s17_s10 = int_to_ptr.vmem [resolvable:$true] %s16_s10  ;;  %s260_s12 = int_to_ptr.vmem [resolvable:$true] %s25_s12 }
   0x4   :  { %s165_s15 = scalar_lea.hbm %s303_s0, 128 }
   0x5   :  { %p166_p0 = scmp.ne.s32.totalorder %s303_s0, %s165_s15  ;;  %p169_p1 = scmp.lt.u32.totalorder %s165_s15, %s303_s0 }
   0x7   :  { %p171_p2 = pnand %p169_p1, %p166_p0 }
   0x9   :  { %174 = shalt.err (!%p171_p2)
}
   0xa   :  { %s175_s20 = scalar_lea.vmem %s17_s10, 128  ;;  %p180_p4 = scmp.lt.s32.totalorder %s17_s10, %s17_s10 }
   0xb   :  { %p176_p3 = scmp.ne.s32.totalorder %s17_s10, %s175_s20  ;;  %p181_p5 = scmp.lt.s32.totalorder %s175_s20, %s175_s20 }
   0xd   :  { %p182_p6 = por %p181_p5, %p180_p4 }
   0xf   :  { %p183_p7 = pnand %p182_p6, %p176_p3 }
  0x11   :  { %186 = shalt.err (!%p183_p7)
}
  0x12   :  { %19 = dma.hbm_to_vmem [thread:$0]  %s303_s0, 128, %s17_s10, [#allocation3]  }
  0x13   :  { %s187_s25 = scalar_lea.hbm %s304_s1, 512 }
  0x14   :  { %p188_p8 = scmp.ne.s32.totalorder %s304_s1, %s187_s25  ;;  %p191_p9 = scmp.lt.u32.totalorder %s187_s25, %s304_s1 }
  0x16   :  { %p193_p10 = pnand %p191_p9, %p188_p8 }
  0x18   :  { %196 = shalt.err (!%p193_p10)
}
  0x19   :  { %s197_s30 = scalar_lea.vmem %s260_s12, 512  ;;  %p202_p12 = scmp.lt.s32.totalorder %s260_s12, %s260_s12 }
  0x1a   :  { %p198_p11 = scmp.ne.s32.totalorder %s260_s12, %s197_s30  ;;  %p203_p13 = scmp.lt.s32.totalorder %s197_s30, %s197_s30 }
  0x1c   :  { %p204_p0 = por %p203_p13, %p202_p12 }
  0x1e   :  { %p205_p1 = pnand %p204_p0, %p198_p11 }
  0x20   :  { %208 = shalt.err (!%p205_p1)
}
  0x21   :  { %s239_s0 = smov 128   ;;  %s240_s3 = smov 8  }
  0x22   :  { %31 = dma.hbm_to_vmem [thread:$0]  %s304_s1, 512, %s260_s12, [#allocation6], %s239_s0, %s239_s0, %s240_s3  }
  0x23   :  { %231 = dma.done.wait [#allocation3], 128  }
  0x24   :  { %232 = vsyncadd [#allocation3], 4294967168 }
  0x25   :  { %233 = dma.done.wait [#allocation6], 512  }
  0x26   :  { %234 = vsyncadd [#allocation6], 4294966784  ;;  %v241_v0 = vmov 0.0|0.0   ;;  %vm242_vm0 = vmmov 0   ;;  %v243_v1 = vmov 0.0   ;;  %v39_v2 = vld [vmem:[#allocation5] sm:$0xff] }
  0x27   :  { %151 = vmatprep.subr.bf16.mxu0 %v241_v0  ;;  %148 = vmatprep.mubr.msk.f32.mxu0 %vm242_vm0, %v243_v1  ;;  %v40_v3 = vld [vmem:[#allocation5 + $0x8] sm:$0xff]  ;;  %v41_v4 = vld [vmem:[#allocation5 + $0x10] sm:$0xff]  ;;  %v42_v6 = vld [vmem:[#allocation5 + $0x18] sm:$0xff]  ;;  %vm43_vm1 = vcmask 261120   ;;  %s244_s1 = smov [#allocation7]  }
  0x28   :  { %v152_v5 = vpack.c.bf16 %v40_v3, %v39_v2  ;;  %v155_v7 = vpack.c.bf16 %v42_v6, %v41_v4  ;;  %v38_v8 = vld [vmem:[#allocation2] sm:$0xff]  ;;  %s124_s6 = sshll.u32 %s244_s1, 4  ;;  %s125_s6 = int_to_ptr.vmem [resolvable:$true] %s124_s6 }
  0x29   :  { %s209_s7 = scalar_lea.vmem %s125_s6, 128  ;;  %p214_p3 = scmp.lt.s32.totalorder %s125_s6, %s125_s6 }
  0x2a   :  { %153 = vmatpush3.bf16.msra.mxu0 %v152_v5  ;;  %p210_p2 = scmp.ne.s32.totalorder %s125_s6, %s209_s7  ;;  %p215_p4 = scmp.lt.s32.totalorder %s209_s7, %s209_s7 }
  0x2b   :  { %154 = vmatprep.subr.bf16.mxu0 %v241_v0 }
  0x2c   :  { %p216_p5 = por %p215_p4, %p214_p3 }
  0x2e   :  { %156 = vmatpush3.bf16.msra.mxu0 %v155_v7  ;;  %p217_p6 = pnand %p216_p5, %p210_p2 }
  0x31   :  { %149 = vmatmul.mubr.msk.f32.vlgmr.msra.gmra.mrb[0].mxu0 %vm43_vm1, %v38_v8 }
 0x104   :  { %v113_v9 = vpop.f32.mrb[0].mxu0 }
 0x105   :  { %117 = vst.msk [vmem:[#allocation7] sm:$0xff] %vm43_vm1, %v113_v9  ;;  %v150_v10 = vpop.f32.mrb[1].mxu0 }
 0x106   :  { %220 = shalt.err (!%p217_p6)
}
 0x107   :  { %s221_s10 = scalar_lea.hbm %s305_s2, 128 }
 0x108   :  { %p222_p7 = scmp.ne.s32.totalorder %s305_s2, %s221_s10  ;;  %p225_p8 = scmp.lt.u32.totalorder %s221_s10, %s305_s2 }
 0x10a   :  { %p227_p9 = pnand %p225_p8, %p222_p7 }
 0x10c   :  { %230 = shalt.err (!%p227_p9)
}
 0x10d   :  { %127 = dma.vmem_to_hbm [thread:$0]  %s125_s6, 128, %s305_s2, [#allocation4]  }
 0x10e   :  { %235 = dma.done.wait [#allocation4], 128  }
 0x10f   :  { %236 = vsyncadd [#allocation4], 4294967168 }
 0x110   :  { %131 = vsyncpa [#allocation3], 1 }
 0x111   :  { %132 = vsyncpa [#allocation6], 1 }
 0x112   :  { %133 = vsyncpa [#allocation4], 1 }

</bundles_post_ra>
